<compile_context>
chip_gen: v7x
topology: tpu7x:2x2x1
jax: 0.10.0
libtpu: 0.0.40
codegen_flags: <defaults>
</compile_context>

<pallas_src>
from functools import partial

import jax
import jax.numpy as jnp
from jax.experimental import pallas as pl
from jax.experimental.pallas import tpu as pltpu

DIM = 128        # feature dimension (module default dim=128)
K_QUEUE = 512    # queue size (small; must satisfy K % batch == 0)
M_MOM = 0.999    # unused: reference forward() never calls the momentum update
T_TEMP = 0.07


# ---------------------------------------------------------------------------
# Generation-aware VMEM budget (v7x: 64 MiB physical; v5e/v6e: 128 MiB).
# ---------------------------------------------------------------------------
def _vmem_budget_bytes():
    cap = 128 * 1024 * 1024
    try:
        info = pltpu.get_tpu_info()
        cap = int(getattr(info, "vmem_capacity_bytes", cap))
    except Exception:
        pass
    # Stay well under physical VMEM (headroom for compiler scratch / pipelining).
    return min(cap // 2, 48 * 1024 * 1024)


def _choose_f_tile(R, F, dim, budget):
    """Pick the contraction-axis tile for the encoder matmul."""
    def ws_bytes(tk, tiled):
        x_t = R * tk * 2 * 2           # bf16 x tile, double-buffered
        w_t = tk * dim * 2 * 2         # bf16 weight tile, double-buffered
        o_t = R * dim * 4 * 2          # f32 output, double-buffered
        b_t = dim * 4 * 2              # f32 bias
        acc = R * dim * 4 if tiled else 0
        return x_t + w_t + o_t + b_t + acc

    if ws_bytes(F, tiled=False) <= budget:
        return F                       # no F tiling: single step, no scratch
    for tk in (16384, 8192, 4096, 2048, 1024, 512, 256, 128):
        if F % tk == 0 and ws_bytes(tk, tiled=True) <= budget:
            return tk
    # TODO(synk): non-divisible F would need masked/padded tiles; fall back to
    # streaming the full F extent (may exceed the VMEM budget for huge prime F).
    return F


def _choose_row_tile(R):
    """Prefer one big row block so the (F, dim) weight streams only once."""
    if R <= 512 or R % 8 != 0:
        return R
    for rb in (512, 256, 128):
        if R % rb == 0:
            return rb
    return R


def _choose_kq_tile(R, C, Kq, budget):
    """Pick the K tile for the negatives matmul."""
    def ws_bytes(tk):
        q_t = R * C * 2                # bf16 q (constant block)
        qu_t = C * tk * 2 * 2          # bf16 queue tile, double-buffered
        o_t = R * tk * 4 * 2           # f32 neg output, double-buffered
        return q_t + qu_t + o_t

    if ws_bytes(Kq) <= budget:
        return Kq
    for tk in (65536, 32768, 16384, 8192, 4096, 2048, 1024, 512, 256, 128):
        if Kq % tk == 0 and ws_bytes(tk) <= budget:
            return tk
    return Kq


# ---------------------------------------------------------------------------
# Kernel 1: fused encoder linear projection + L2 normalize.
#   bf16 operands, f32 MXU accumulation, rsqrt (EUP) normalize on f32.
#   Two bodies: single-step (no scratch) and F-tiled (f32 VMEM accumulator).
# ---------------------------------------------------------------------------
def _encode_norm_single_kernel(x_ref, w_ref, b_ref, o_ref):
    feat = jnp.dot(x_ref[...], w_ref[...],
                   preferred_element_type=jnp.float32) + b_ref[...]
    # F.normalize(feat, dim=1): feat / max(||feat||, 1e-12)
    nrm2 = jnp.sum(feat * feat, axis=1, keepdims=True)
    inv = jax.lax.rsqrt(jnp.maximum(nrm2, 1e-24))
    o_ref[...] = feat * inv


def _encode_norm_tiled_kernel(x_ref, w_ref, b_ref, o_ref, acc_ref):
    kk = pl.program_id(1)

    @pl.when(kk == 0)
    def _():
        acc_ref[...] = jnp.zeros_like(acc_ref)

    acc_ref[...] += jnp.dot(x_ref[...], w_ref[...],
                            preferred_element_type=jnp.float32)

    @pl.when(kk == pl.num_programs(1) - 1)
    def _():
        feat = acc_ref[...] + b_ref[...]
        nrm2 = jnp.sum(feat * feat, axis=1, keepdims=True)
        inv = jax.lax.rsqrt(jnp.maximum(nrm2, 1e-24))
        o_ref[...] = feat * inv


def encode_and_normalize(x_bf, w_bf, b):
    """x_bf: (R, F) bf16, w_bf: (F, dim) bf16, b: (1, dim) f32 -> (R, dim) f32."""
    R, F = x_bf.shape
    dim = w_bf.shape[1]
    budget = _vmem_budget_bytes()

    row_blk = _choose_row_tile(R)
    n_r = R // row_blk
    tk = _choose_f_tile(row_blk, F, dim, budget)

    if tk == F:
        # Single contraction step: no accumulator scratch, no pl.when.
        return pl.pallas_call(
            _encode_norm_single_kernel,
            out_shape=jax.ShapeDtypeStruct((R, dim), jnp.float32),
            grid_spec=pltpu.PrefetchScalarGridSpec(
                num_scalar_prefetch=0,
                grid=(n_r,),
                in_specs=[
                    pl.BlockSpec((row_blk, F), lambda r: (r, 0)),
                    pl.BlockSpec((F, dim), lambda r: (0, 0)),
                    pl.BlockSpec((1, dim), lambda r: (0, 0)),
                ],
                out_specs=pl.BlockSpec((row_blk, dim), lambda r: (r, 0)),
            ),
            compiler_params=pltpu.CompilerParams(
                # Rows stay on one core: splitting would re-stream the (F, dim)
                # weight per core on a weight-stream-bound kernel (v7x note).
                dimension_semantics=("arbitrary",),
                vmem_limit_bytes=budget),
        )(x_bf, w_bf, b)

    n_k = F // tk
    return pl.pallas_call(
        _encode_norm_tiled_kernel,
        out_shape=jax.ShapeDtypeStruct((R, dim), jnp.float32),
        grid_spec=pltpu.PrefetchScalarGridSpec(
            num_scalar_prefetch=0,
            grid=(n_r, n_k),
            in_specs=[
                pl.BlockSpec((row_blk, tk), lambda r, kk: (r, kk)),
                pl.BlockSpec((tk, dim), lambda r, kk: (kk, 0)),
                pl.BlockSpec((1, dim), lambda r, kk: (0, 0)),
            ],
            out_specs=pl.BlockSpec((row_blk, dim), lambda r, kk: (r, 0)),
            scratch_shapes=[pltpu.VMEM((row_blk, dim), jnp.float32)],
        ),
        compiler_params=pltpu.CompilerParams(
            dimension_semantics=("arbitrary", "arbitrary"),
            vmem_limit_bytes=budget),
    )(x_bf, w_bf, b)


# ---------------------------------------------------------------------------
# Kernel 2: negatives logits only — lane-dense (3B, K) matmul, already /T.
#   bf16 operands, f32 accumulation; K axis is megacore-shardable ('parallel').
#   The tiny (3B, 2) positives einsum is done by XLA in the wrapper.
# ---------------------------------------------------------------------------
def _neg_logits_kernel(q_ref, queue_ref, neg_ref):
    neg_ref[...] = jnp.dot(q_ref[...], queue_ref[...],
                           preferred_element_type=jnp.float32) * jnp.float32(1.0 / T_TEMP)


def logits_neg(q_bf, queue_bf):
    """q_bf: (R, dim) bf16, queue_bf: (dim, K) bf16 -> (R, K) f32, already /T."""
    R, C = q_bf.shape
    Kq = queue_bf.shape[1]
    budget = _vmem_budget_bytes()
    tkq = _choose_kq_tile(R, C, Kq, budget)
    n_kq = Kq // tkq
    return pl.pallas_call(
        _neg_logits_kernel,
        out_shape=jax.ShapeDtypeStruct((R, Kq), jnp.float32),
        grid_spec=pltpu.PrefetchScalarGridSpec(
            num_scalar_prefetch=0,
            grid=(n_kq,),
            in_specs=[
                pl.BlockSpec((R, C), lambda j: (0, 0)),
                pl.BlockSpec((C, tkq), lambda j: (0, j)),
            ],
            out_specs=pl.BlockSpec((R, tkq), lambda j: (0, j)),
        ),
        compiler_params=pltpu.CompilerParams(
            dimension_semantics=("parallel",),
            vmem_limit_bytes=budget),
    )(q_bf, queue_bf)


# ---------------------------------------------------------------------------
# Functional, jitted MoCo step.  Queue (bf16) is donated -> in-place enqueue.
# ---------------------------------------------------------------------------
@partial(jax.jit, donate_argnums=(4,))
def _moco_step(w_q, b_q, w_k, b_k, queue, queue_ptr,
               im_q, im_k, add_posq, add_posk, mix_q):
    B = im_q.shape[0]
    dim = w_q.shape[1]
    Kq = queue.shape[1]
    inv_t = jnp.float32(1.0 / T_TEMP)
    # Cast to bf16 BEFORE the concat so only one bf16 slab is materialized.
    flat_bf = lambda x: x.reshape(x.shape[0], -1).astype(jnp.bfloat16)

    # ---- query branch: one fused (3B, F) matmul against w_q ----
    xq = jnp.concatenate([flat_bf(im_q), flat_bf(add_posq), flat_bf(mix_q)], axis=0)
    q_feats = encode_and_normalize(xq, w_q, b_q)          # (3B, dim) f32 [q|add_q|mix]

    # ---- key branch (no-grad); shuffle + unshuffle cancel on one device ----
    # TODO(synk): cross-device shuffle-BN / group all_gather needs RDMA (P6);
    #             identity on a single device / one-rank subgroup.
    xk = jnp.concatenate([flat_bf(im_k), flat_bf(add_posk)], axis=0)
    k_feats = jax.lax.stop_gradient(encode_and_normalize(xk, w_k, b_k))  # (2B, dim)
    k, add_k = k_feats[:B], k_feats[B:]
    all_k = jnp.concatenate([k[:, None, :], add_k[:, None, :]], axis=1)  # (B, 2, dim)

    # ---- positives (tiny) in XLA: einsum('nmc,snc->snm') / T ----
    q3 = q_feats.reshape(3, B, dim)
    pos = jnp.einsum('nmc,snc->snm', all_k, q3,
                     preferred_element_type=jnp.float32) * inv_t        # (3, B, 2)

    # ---- negatives for [q, add_q, mix_q] against the bf16 queue (Pallas) ----
    neg = logits_neg(q_feats.astype(jnp.bfloat16), queue)               # (3B, K), /T
    neg3 = neg.reshape(3, B, Kq)

    def assemble(p, n):
        # cat([pos.unsqueeze(-1), neg.unsqueeze(1).repeat(1,2,1)], dim=2)
        return jnp.concatenate(
            [p[:, :, None], jnp.broadcast_to(n[:, None, :], (B, 2, Kq))], axis=-1)

    logits0 = assemble(pos[0], neg3[0])                  # q_i = all_q[:, 0]
    logits1 = assemble(pos[1], neg3[1])                  # q_i = all_q[:, 1]
    mix_logits = assemble(pos[2], neg3[2])
    labels = jnp.zeros((B,), jnp.int32)

    # ---- dequeue & enqueue (after logits, as in torch); in place via donation ----
    ptr = queue_ptr[0]
    new_queue = jax.lax.dynamic_update_slice(
        queue, k.T.astype(queue.dtype), (jnp.int32(0), ptr))
    new_ptr = (queue_ptr + B) % Kq

    return logits0, logits1, mix_logits, labels, new_queue, new_ptr


# ---------------------------------------------------------------------------
# MoCo module wrapper (parameters + buffers), Pallas-backed hot paths
# ---------------------------------------------------------------------------
class MoCoPallas:
    def __init__(self, key, in_features, dim=DIM, K=K_QUEUE, m=M_MOM, T=T_TEMP):
        self.dim, self.K, self.m, self.T = dim, K, m, T
        k1, k2, k3 = jax.random.split(key, 3)
        # encoder_q (trainable) and encoder_k (frozen key encoder).
        # Weights stored persistently in bf16 (MXU operand dtype); keep an f32
        # master copy only if momentum / training updates are added later.
        self.w_q = (jax.random.normal(k1, (in_features, dim), jnp.float32)
                    * 0.02).astype(jnp.bfloat16)
        self.b_q = jnp.zeros((1, dim), jnp.float32)
        self.w_k = (jax.random.normal(k2, (in_features, dim), jnp.float32)
                    * 0.02).astype(jnp.bfloat16)
        self.b_k = jnp.zeros((1, dim), jnp.float32)
        # register_buffer('queue', randn(dim, K)); normalize along dim=0.
        # Stored persistently in bf16: halves the dominant (dim, K) HBM stream.
        queue = jax.random.normal(k3, (dim, K), jnp.float32)
        queue = queue / jnp.maximum(
            jnp.sqrt(jnp.sum(queue * queue, axis=0, keepdims=True)), 1e-12)
        self.queue = queue.astype(jnp.bfloat16)
        self.queue_ptr = jnp.zeros((1,), jnp.int32)   # register_buffer('queue_ptr')

    def forward(self, im_q, im_k, add_posq, add_posk, mix_q):
        B = im_q.shape[0]
        assert self.K % B == 0
        (logits0, logits1, mix_logits, labels,
         new_queue, new_ptr) = _moco_step(
            self.w_q, self.b_q, self.w_k, self.b_k, self.queue, self.queue_ptr,
            im_q, im_k, add_posq, add_posk, mix_q)
        self.queue = new_queue
        self.queue_ptr = new_ptr
        return [logits0, logits1], mix_logits, labels


if __name__ == "__main__":
    B, C, H, W = 2, 4, 16, 16
    key = jax.random.PRNGKey(0)
    kp, k1, k2, k3, k4, k5 = jax.random.split(key, 6)

    moco = MoCoPallas(kp, in_features=C * H * W)

    im_q = jax.random.normal(k1, (B, C, H, W), jnp.float32)
    im_k = jax.random.normal(k2, (B, C, H, W), jnp.float32)
    add_posq = jax.random.normal(k3, (B, C, H, W), jnp.float32)
    add_posk = jax.random.normal(k4, (B, C, H, W), jnp.float32)
    mix_q = jax.random.normal(k5, (B, C, H, W), jnp.float32)

    logits, mix_logits, labels = moco.forward(im_q, im_k, add_posq, add_posk, mix_q)

    jax.block_until_ready(logits[0])
    jax.block_until_ready(logits[1])
    jax.block_until_ready(mix_logits)
    jax.block_until_ready(labels)
    jax.block_until_ready(moco.queue)
    jax.block_until_ready(moco.queue_ptr)

    assert logits[0].shape == (B, 2, 1 + K_QUEUE)
    assert logits[1].shape == (B, 2, 1 + K_QUEUE)
    assert mix_logits.shape == (B, 2, 1 + K_QUEUE)
    assert labels.shape == (B,)
    assert moco.queue.shape == (DIM, K_QUEUE)
    assert int(moco.queue_ptr[0]) == B
    assert bool(jnp.all(jnp.isfinite(logits[0])))
    assert bool(jnp.all(jnp.isfinite(logits[1])))
    assert bool(jnp.all(jnp.isfinite(mix_logits)))
    print("KERNEL_OK")
</pallas_src>

<mosaic_0001>
module attributes {stable_mosaic.version = 11 : i64} {
  func.func @_encode_norm_single_kernel(%arg0: i32, %arg1: memref<4x1024xbf16, #tpu.memory_space<vmem>>, %arg2: memref<1024x128xbf16, #tpu.memory_space<vmem>>, %arg3: memref<1x128xf32, #tpu.memory_space<vmem>>, %arg4: memref<4x128xf32, #tpu.memory_space<vmem>>) attributes {dimension_semantics = [#tpu.dimension_semantics<arbitrary>], iteration_bounds = array<i64: 1>, scalar_prefetch = 0 : i64, scratch_operands = 0 : i64, tpu.core_type = #tpu.core_type<tc>, window_params = [{transform_indices = @transform_0, window_bounds = array<i64: 4, 1024>}, {pipeline_mode = #tpu.pipeline_mode<synchronous>, transform_indices = @transform_1, window_bounds = array<i64: 1024, 128>}, {pipeline_mode = #tpu.pipeline_mode<synchronous>, transform_indices = @transform_2, window_bounds = array<i64: 1, 128>}, {transform_indices = @transform_3, window_bounds = array<i64: 4, 128>}]} {
    %c0 = arith.constant 0 : index
    %c0_0 = arith.constant 0 : index
    %0 = vector.load %arg1[%c0, %c0_0] : memref<4x1024xbf16, #tpu.memory_space<vmem>>, vector<4x1024xbf16>
    %c0_1 = arith.constant 0 : index
    %c0_2 = arith.constant 0 : index
    %1 = vector.load %arg2[%c0_1, %c0_2] : memref<1024x128xbf16, #tpu.memory_space<vmem>>, vector<1024x128xbf16>
    %cst = arith.constant dense<0.000000e+00> : vector<4x128xf32>
    %2 = tpu.matmul %0, %1, %cst {dimension_numbers = #tpu.dot_dimension_numbers<[1], [0], [0], [1], [0, 0, 1, 1], [], []>} : vector<4x1024xbf16>, vector<1024x128xbf16>, vector<4x128xf32> -> vector<4x128xf32>
    %c0_3 = arith.constant 0 : index
    %c0_4 = arith.constant 0 : index
    %3 = vector.load %arg3[%c0_3, %c0_4] : memref<1x128xf32, #tpu.memory_space<vmem>>, vector<1x128xf32>
    %4 = vector.broadcast %3 : vector<1x128xf32> to vector<4x128xf32>
    %5 = arith.addf %2, %4 : vector<4x128xf32>
    %6 = arith.mulf %5, %5 : vector<4x128xf32>
    %cst_5 = arith.constant dense<0.000000e+00> : vector<4xf32>
    %7 = vector.multi_reduction <add>, %6, %cst_5 [1] : vector<4x128xf32> to vector<4xf32>
    %8 = vector.shape_cast %7 : vector<4xf32> to vector<4x1xf32>
    %cst_6 = arith.constant 1.000000e-24 : f32
    %9 = vector.broadcast %cst_6 : f32 to vector<4x1xf32>
    %10 = arith.maximumf %8, %9 : vector<4x1xf32>
    %11 = math.rsqrt %10 : vector<4x1xf32>
    %12 = vector.broadcast %11 : vector<4x1xf32> to vector<4x128xf32>
    %13 = arith.mulf %5, %12 : vector<4x128xf32>
    %c0_7 = arith.constant 0 : index
    %c0_8 = arith.constant 0 : index
    %14 = vector.load %arg4[%c0_7, %c0_8] : memref<4x128xf32, #tpu.memory_space<vmem>>, vector<4x128xf32>
    tpu.vector_store %arg4[%c0_7, %c0_8], %13 {strides = array<i32>} : memref<4x128xf32, #tpu.memory_space<vmem>>, vector<4x128xf32>,
    return
  }
  func.func @transform_0(%arg0: i32) -> (i32, i32) {
    %c0_i32 = arith.constant 0 : i32
    %c0_i32_0 = arith.constant 0 : i32
    return %arg0, %c0_i32 : i32, i32
  }
  func.func @transform_1(%arg0: i32) -> (i32, i32) {
    %c0_i32 = arith.constant 0 : i32
    %c0_i32_0 = arith.constant 0 : i32
    %c0_i32_1 = arith.constant 0 : i32
    return %c0_i32, %c0_i32_0 : i32, i32
  }
  func.func @transform_2(%arg0: i32) -> (i32, i32) {
    %c0_i32 = arith.constant 0 : i32
    %c0_i32_0 = arith.constant 0 : i32
    %c0_i32_1 = arith.constant 0 : i32
    return %c0_i32, %c0_i32_0 : i32, i32
  }
  func.func @transform_3(%arg0: i32) -> (i32, i32) {
    %c0_i32 = arith.constant 0 : i32
    %c0_i32_0 = arith.constant 0 : i32
    return %arg0, %c0_i32 : i32, i32
  }
}

module attributes {stable_mosaic.version = 11 : i64} {
  func.func @_encode_norm_single_kernel(%arg0: i32, %arg1: memref<6x1024xbf16, #tpu.memory_space<vmem>>, %arg2: memref<1024x128xbf16, #tpu.memory_space<vmem>>, %arg3: memref<1x128xf32, #tpu.memory_space<vmem>>, %arg4: memref<6x128xf32, #tpu.memory_space<vmem>>) attributes {dimension_semantics = [#tpu.dimension_semantics<arbitrary>], iteration_bounds = array<i64: 1>, scalar_prefetch = 0 : i64, scratch_operands = 0 : i64, tpu.core_type = #tpu.core_type<tc>, window_params = [{transform_indices = @transform_0, window_bounds = array<i64: 6, 1024>}, {pipeline_mode = #tpu.pipeline_mode<synchronous>, transform_indices = @transform_1, window_bounds = array<i64: 1024, 128>}, {pipeline_mode = #tpu.pipeline_mode<synchronous>, transform_indices = @transform_2, window_bounds = array<i64: 1, 128>}, {transform_indices = @transform_3, window_bounds = array<i64: 6, 128>}]} {
    %c0 = arith.constant 0 : index
    %c0_0 = arith.constant 0 : index
    %0 = vector.load %arg1[%c0, %c0_0] : memref<6x1024xbf16, #tpu.memory_space<vmem>>, vector<6x1024xbf16>
    %c0_1 = arith.constant 0 : index
    %c0_2 = arith.constant 0 : index
    %1 = vector.load %arg2[%c0_1, %c0_2] : memref<1024x128xbf16, #tpu.memory_space<vmem>>, vector<1024x128xbf16>
    %cst = arith.constant dense<0.000000e+00> : vector<6x128xf32>
    %2 = tpu.matmul %0, %1, %cst {dimension_numbers = #tpu.dot_dimension_numbers<[1], [0], [0], [1], [0, 0, 1, 1], [], []>} : vector<6x1024xbf16>, vector<1024x128xbf16>, vector<6x128xf32> -> vector<6x128xf32>
    %c0_3 = arith.constant 0 : index
    %c0_4 = arith.constant 0 : index
    %3 = vector.load %arg3[%c0_3, %c0_4] : memref<1x128xf32, #tpu.memory_space<vmem>>, vector<1x128xf32>
    %4 = vector.broadcast %3 : vector<1x128xf32> to vector<6x128xf32>
    %5 = arith.addf %2, %4 : vector<6x128xf32>
    %6 = arith.mulf %5, %5 : vector<6x128xf32>
    %cst_5 = arith.constant dense<0.000000e+00> : vector<6xf32>
    %7 = vector.multi_reduction <add>, %6, %cst_5 [1] : vector<6x128xf32> to vector<6xf32>
    %8 = vector.shape_cast %7 : vector<6xf32> to vector<6x1xf32>
    %cst_6 = arith.constant 1.000000e-24 : f32
    %9 = vector.broadcast %cst_6 : f32 to vector<6x1xf32>
    %10 = arith.maximumf %8, %9 : vector<6x1xf32>
    %11 = math.rsqrt %10 : vector<6x1xf32>
    %12 = vector.broadcast %11 : vector<6x1xf32> to vector<6x128xf32>
    %13 = arith.mulf %5, %12 : vector<6x128xf32>
    %c0_7 = arith.constant 0 : index
    %c0_8 = arith.constant 0 : index
    %14 = vector.load %arg4[%c0_7, %c0_8] : memref<6x128xf32, #tpu.memory_space<vmem>>, vector<6x128xf32>
    tpu.vector_store %arg4[%c0_7, %c0_8], %13 {strides = array<i32>} : memref<6x128xf32, #tpu.memory_space<vmem>>, vector<6x128xf32>,
    return
  }
  func.func @transform_0(%arg0: i32) -> (i32, i32) {
    %c0_i32 = arith.constant 0 : i32
    %c0_i32_0 = arith.constant 0 : i32
    return %arg0, %c0_i32 : i32, i32
  }
  func.func @transform_1(%arg0: i32) -> (i32, i32) {
    %c0_i32 = arith.constant 0 : i32
    %c0_i32_0 = arith.constant 0 : i32
    %c0_i32_1 = arith.constant 0 : i32
    return %c0_i32, %c0_i32_0 : i32, i32
  }
  func.func @transform_2(%arg0: i32) -> (i32, i32) {
    %c0_i32 = arith.constant 0 : i32
    %c0_i32_0 = arith.constant 0 : i32
    %c0_i32_1 = arith.constant 0 : i32
    return %c0_i32, %c0_i32_0 : i32, i32
  }
  func.func @transform_3(%arg0: i32) -> (i32, i32) {
    %c0_i32 = arith.constant 0 : i32
    %c0_i32_0 = arith.constant 0 : i32
    return %arg0, %c0_i32 : i32, i32
  }
}

module attributes {stable_mosaic.version = 11 : i64} {
  func.func @_neg_logits_kernel(%arg0: i32, %arg1: memref<6x128xbf16, #tpu.memory_space<vmem>>, %arg2: memref<128x512xbf16, #tpu.memory_space<vmem>>, %arg3: memref<6x512xf32, #tpu.memory_space<vmem>>) attributes {dimension_semantics = [#tpu.dimension_semantics<parallel>], iteration_bounds = array<i64: 1>, scalar_prefetch = 0 : i64, scratch_operands = 0 : i64, tpu.core_type = #tpu.core_type<tc>, window_params = [{pipeline_mode = #tpu.pipeline_mode<synchronous>, transform_indices = @transform_0, window_bounds = array<i64: 6, 128>}, {transform_indices = @transform_1, window_bounds = array<i64: 128, 512>}, {transform_indices = @transform_2, window_bounds = array<i64: 6, 512>}]} {
    %c0 = arith.constant 0 : index
    %c0_0 = arith.constant 0 : index
    %0 = vector.load %arg1[%c0, %c0_0] : memref<6x128xbf16, #tpu.memory_space<vmem>>, vector<6x128xbf16>
    %c0_1 = arith.constant 0 : index
    %c0_2 = arith.constant 0 : index
    %1 = vector.load %arg2[%c0_1, %c0_2] : memref<128x512xbf16, #tpu.memory_space<vmem>>, vector<128x512xbf16>
    %cst = arith.constant dense<0.000000e+00> : vector<6x512xf32>
    %2 = tpu.matmul %0, %1, %cst {dimension_numbers = #tpu.dot_dimension_numbers<[1], [0], [0], [1], [0, 0, 1, 1], [], []>} : vector<6x128xbf16>, vector<128x512xbf16>, vector<6x512xf32> -> vector<6x512xf32>
    %cst_3 = arith.constant 14.2857141 : f32
    %3 = vector.broadcast %cst_3 : f32 to vector<6x512xf32>
    %4 = arith.mulf %2, %3 : vector<6x512xf32>
    %c0_4 = arith.constant 0 : index
    %c0_5 = arith.constant 0 : index
    %5 = vector.load %arg3[%c0_4, %c0_5] : memref<6x512xf32, #tpu.memory_space<vmem>>, vector<6x512xf32>
    tpu.vector_store %arg3[%c0_4, %c0_5], %4 {strides = array<i32>} : memref<6x512xf32, #tpu.memory_space<vmem>>, vector<6x512xf32>,
    return
  }
  func.func @transform_0(%arg0: i32) -> (i32, i32) {
    %c0_i32 = arith.constant 0 : i32
    %c0_i32_0 = arith.constant 0 : i32
    %c0_i32_1 = arith.constant 0 : i32
    return %c0_i32, %c0_i32_0 : i32, i32
  }
  func.func @transform_1(%arg0: i32) -> (i32, i32) {
    %c0_i32 = arith.constant 0 : i32
    %c0_i32_0 = arith.constant 0 : i32
    return %c0_i32, %arg0 : i32, i32
  }
  func.func @transform_2(%arg0: i32) -> (i32, i32) {
    %c0_i32 = arith.constant 0 : i32
    %c0_i32_0 = arith.constant 0 : i32
    return %c0_i32, %arg0 : i32, i32
  }
}

</mosaic_0001>

<bundles_post_ra>
// kernel: _moco_step.5
= control target key start
LH: loop header
LB: loop body
LE: loop exit
PB: predicated region body
PF: predicated region fallthrough
CT: control target
= control target key end

     0   :  { %v380_v1 = vmov 0   ;;  %s507_s1 = inlined_call_operand.vmem [shape: bf16[128,512], index: 1, kind: input, shape index: {}]   ;;  %s508_s0 = inlined_call_operand.vmem [shape: bf16[6,128], index: 0, kind: input, shape index: {}]   ;;  %s509_s2 = inlined_call_operand.vmem [shape: f32[6,512], index: 2, kind: output, shape index: {}]  }
   0x1   :  { %v332_v0 = vld [vmem:[%s507_s1 + $0x4] ss:$16 sps:$4 sm:$0xff]   ;;  %237 = vmatprep.mubr.bf16.mxu0 %v380_v1  ;;  %278 = vmatprep.mubr.bf16.mxu1 %v380_v1  ;;  %v334_v2 = vld [vmem:[%s507_s1 + $0xc] ss:$16 sps:$4 sm:$0xff]   ;;  %v336_v3 = vld [vmem:[%s507_s1] ss:$16 sps:$4 sm:$0xff]  }
   0x2   :  { %205 = vmatprep.subr.bf16.mxu0 %v332_v0  ;;  %v337_v4 = vld [vmem:[%s507_s1 + $0x8] ss:$16 sps:$4 sm:$0xff]   ;;  %246 = vmatprep.subr.bf16.mxu1 %v334_v2  ;;  %v338_v5 = vld [vmem:[%s507_s1 + $0x24] ss:$16 sps:$4 sm:$0xff]   ;;  %v340_v6 = vld [vmem:[%s507_s1 + $0x2c] ss:$16 sps:$4 sm:$0xff]  }
   0x3   :  { %206 = vmatpush1.bf16.msra.mxu0 %v336_v3  ;;  %247 = vmatpush1.bf16.msra.mxu1 %v337_v4  ;;  %v342_v7 = vld [vmem:[%s507_s1 + $0x20] ss:$16 sps:$4 sm:$0xff]   ;;  %v343_v8 = vld [vmem:[%s507_s1 + $0x28] ss:$16 sps:$4 sm:$0xff]   ;;  %v344_v9 = vld [vmem:[%s507_s1 + $0x44] ss:$16 sps:$4 sm:$0xff]  }
   0x4   :  { %207 = vmatprep.subr.bf16.mxu0 %v338_v5  ;;  %248 = vmatprep.subr.bf16.mxu1 %v340_v6  ;;  %v346_v10 = vld [vmem:[%s507_s1 + $0x4c] ss:$16 sps:$4 sm:$0xff]   ;;  %v348_v11 = vld [vmem:[%s507_s1 + $0x40] ss:$16 sps:$4 sm:$0xff]   ;;  %v349_v12 = vld [vmem:[%s507_s1 + $0x48] ss:$16 sps:$4 sm:$0xff]  }
   0x5   :  { %v350_v13 = vld [vmem:[%s507_s1 + $0x64] ss:$16 sps:$4 sm:$0xff]   ;;  %v352_v14 = vld [vmem:[%s507_s1 + $0x6c] ss:$16 sps:$4 sm:$0xff]   ;;  %v354_v15 = vld [vmem:[%s507_s1 + $0x60] ss:$16 sps:$4 sm:$0xff]  }
   0x6   :  { %v355_v16 = vld [vmem:[%s507_s1 + $0x68] ss:$16 sps:$4 sm:$0xff]   ;;  %v356_v17 = vld [vmem:[%s507_s1 + $0x84] ss:$16 sps:$4 sm:$0xff]   ;;  %v358_v18 = vld [vmem:[%s507_s1 + $0x8c] ss:$16 sps:$4 sm:$0xff]  }
   0x7   :  { %208 = vmatpush1.bf16.msra.mxu0 %v342_v7  ;;  %249 = vmatpush1.bf16.msra.mxu1 %v343_v8  ;;  %v360_v19 = vld [vmem:[%s507_s1 + $0x80] ss:$16 sps:$4 sm:$0xff]   ;;  %v361_v20 = vld [vmem:[%s507_s1 + $0x88] ss:$16 sps:$4 sm:$0xff]   ;;  %v362_v21 = vld [vmem:[%s507_s1 + $0xa4] ss:$16 sps:$4 sm:$0xff]  }
   0x8   :  { %209 = vmatprep.subr.bf16.mxu0 %v344_v9  ;;  %250 = vmatprep.subr.bf16.mxu1 %v346_v10  ;;  %v364_v22 = vld [vmem:[%s507_s1 + $0xac] ss:$16 sps:$4 sm:$0xff]   ;;  %v366_v23 = vld [vmem:[%s507_s1 + $0xa0] ss:$16 sps:$4 sm:$0xff]   ;;  %v367_v24 = vld [vmem:[%s507_s1 + $0xa8] ss:$16 sps:$4 sm:$0xff]  }
   0x9   :  { %v368_v25 = vld [vmem:[%s507_s1 + $0xc4] ss:$16 sps:$4 sm:$0xff]   ;;  %v370_v26 = vld [vmem:[%s507_s1 + $0xcc] ss:$16 sps:$4 sm:$0xff]   ;;  %v372_v27 = vld [vmem:[%s507_s1 + $0xc0] ss:$16 sps:$4 sm:$0xff]  }
   0xa   :  { %v373_v28 = vld [vmem:[%s507_s1 + $0xc8] ss:$16 sps:$4 sm:$0xff]   ;;  %v374_v29 = vld [vmem:[%s507_s1 + $0xe4] ss:$16 sps:$4 sm:$0xff]   ;;  %v376_v30 = vld [vmem:[%s507_s1 + $0xec] ss:$16 sps:$4 sm:$0xff]  }
   0xb   :  { %210 = vmatpush1.bf16.msra.mxu0 %v348_v11  ;;  %251 = vmatpush1.bf16.msra.mxu1 %v349_v12  ;;  %v378_v31 = vld [vmem:[%s507_s1 + $0xe0] ss:$16 sps:$4 sm:$0xff]   ;;  %v379_v32 = vld [vmem:[%s507_s1 + $0xe8] ss:$16 sps:$4 sm:$0xff]  }
   0xc   :  { %211 = vmatprep.subr.bf16.mxu0 %v350_v13  ;;  %252 = vmatprep.subr.bf16.mxu1 %v352_v14  ;;  %v12_v33 = vld [vmem:[%s508_s0] sm:$0x7] }
   0xf   :  { %212 = vmatpush1.bf16.msra.mxu0 %v354_v15  ;;  %253 = vmatpush1.bf16.msra.mxu1 %v355_v16 }
  0x10   :  { %213 = vmatprep.subr.bf16.mxu0 %v356_v17  ;;  %254 = vmatprep.subr.bf16.mxu1 %v358_v18 }
  0x13   :  { %214 = vmatpush1.bf16.msra.mxu0 %v360_v19  ;;  %255 = vmatpush1.bf16.msra.mxu1 %v361_v20 }
  0x14   :  { %215 = vmatprep.subr.bf16.mxu0 %v362_v21  ;;  %256 = vmatprep.subr.bf16.mxu1 %v364_v22 }
  0x17   :  { %216 = vmatpush1.bf16.msra.mxu0 %v366_v23  ;;  %257 = vmatpush1.bf16.msra.mxu1 %v367_v24 }
  0x18   :  { %217 = vmatprep.subr.bf16.mxu0 %v368_v25  ;;  %258 = vmatprep.subr.bf16.mxu1 %v370_v26 }
  0x1b   :  { %218 = vmatpush1.bf16.msra.mxu0 %v372_v27  ;;  %259 = vmatpush1.bf16.msra.mxu1 %v373_v28 }
  0x1c   :  { %219 = vmatprep.subr.bf16.mxu0 %v374_v29  ;;  %260 = vmatprep.subr.bf16.mxu1 %v376_v30 }
  0x1f   :  { %220 = vmatpush1.bf16.msra.mxu0 %v378_v31  ;;  %261 = vmatpush1.bf16.msra.mxu1 %v379_v32 }
  0x22   :  { %238 = vmatmul.mubr.bf16.vlgmr.msra.gmra.mrb[0].mxu0 %v12_v33  ;;  %279 = vmatmul.mubr.bf16.vlgmr.msra.gmra.mrb[0].mxu1 %v12_v33 }
  0xf5   :  { %v239_v34 = vpop.f32.mrb[0].mxu0  ;;  %v280_v35 = vpop.f32.mrb[0].mxu1 }
  0xf6   :  { %v287_v36 = vmul.f32 14.285714, %v239_v34  ;;  %v289_v37 = vmul.f32 14.285714, %v280_v35  ;;  %v241_v38 = vpop.f32.mrb[1].mxu0  ;;  %v282_v39 = vpop.f32.mrb[1].mxu1 }
  0xf7   :  { %v288_v40 = vmul.f32 14.285714, %v241_v38  ;;  %v290_v41 = vmul.f32 14.285714, %v282_v39  ;;  %v243_v42 = vpop.f32.mrb[2].mxu0  ;;  %v284_v43 = vpop.f32.mrb[2].mxu1 }
  0xf8   :  { %291 = vst [vmem:[%s509_s2] sm:$0x3f] %v287_v36  ;;  %293 = vst [vmem:[%s509_s2 + $0x10] sm:$0x3f] %v289_v37  ;;  %v244_v44 = vpop.f32.mrb[3].mxu0  ;;  %v285_v45 = vpop.f32.mrb[3].mxu1 }
  0xf9   :  { %292 = vst [vmem:[%s509_s2 + $0x8] sm:$0x3f] %v288_v40  ;;  %294 = vst [vmem:[%s509_s2 + $0x18] sm:$0x3f] %v290_v41 }

// kernel: _moco_step.4
= control target key start
LH: loop header
LB: loop body
LE: loop exit
PB: predicated region body
PF: predicated region fallthrough
CT: control target
= control target key end

     0   :  { %8 = vsyncpa [#allocation3], 0  ;;  %s1013_s12 = smov [#allocation2]   ;;  %s1254_s0 = inlined_call_operand.vmem [shape: bf16[4,1024], index: 0, kind: input, shape index: {}]   ;;  %s1255_s1 = inlined_call_operand.vmem [shape: bf16[1024,128], index: 1, kind: input, shape index: {}]   ;;  %s1256_s2 = inlined_call_operand.hbm [shape: f32[1,128], index: 2, kind: input, shape index: {}]   ;;  %s1257_s3 = inlined_call_operand.vmem [shape: f32[4,128], index: 3, kind: output, shape index: {}]  }
   0x1   :  { %s19_s13 = sshll.u32 %s1013_s12, 4  ;;  %s989_s16 = scalar_lea.hbm %s1256_s2, 16  ;;  %s20_s13 = int_to_ptr.vmem [resolvable:$true] %s19_s13 }
   0x2   :  { %p990_p0 = scmp.ne.s32.totalorder %s1256_s2, %s989_s16  ;;  %p993_p1 = scmp.lt.u32.totalorder %s989_s16, %s1256_s2 }
   0x4   :  { %p995_p2 = pnand %p993_p1, %p990_p0 }
   0x6   :  { %998 = shalt.err (!%p995_p2)
}
   0x7   :  { %s999_s21 = scalar_lea.vmem %s20_s13, 16  ;;  %s1003_s22 = scalar_lea.vmem %s20_s13, 32 }
   0x8   :  { %p1000_p3 = scmp.ne.s32.totalorder %s20_s13, %s999_s21  ;;  %p1004_p4 = scmp.lt.s32.totalorder %s20_s13, %s20_s13 }
   0x9   :  { %p1005_p5 = scmp.lt.s32.totalorder %s1003_s22, %s999_s21 }
   0xb   :  { %p1006_p6 = por %p1005_p5, %p1004_p4 }
   0xd   :  { %p1007_p7 = pnand %p1006_p6, %p1000_p3 }
   0xf   :  { %1010 = shalt.err (!%p1007_p7)
}
  0x10   :  { %22 = dma.hbm_to_vmem [thread:$0]  %s1256_s2, 16, %s20_s13, [#allocation3]  }
  0x11   :  { %1011 = dma.done.wait [#allocation3], 16  }
  0x12   :  { %1012 = vsyncadd [#allocation3], 4294967280  ;;  %v921_v0 = vld [vmem:[%s1255_s1 + $0x40] sm:$0xff]   ;;  %v925_v4 = vld [vmem:[%s1255_s1 + $0x48] sm:$0xff]   ;;  %v1014_v22 = vmov 1983009808   ;;  %v170_v24 = vlaneseq }
  0x13   :  { %v922_v1 = vld [vmem:[%s1255_s1 + $0xc0] sm:$0xff]   ;;  %831 = vmatprep.subr.bf16.mxu0 %v921_v0  ;;  %v926_v5 = vld [vmem:[%s1255_s1 + $0xc8] sm:$0xff]   ;;  %v929_v8 = vld [vmem:[%s1255_s1 + $0x50] sm:$0xff]   ;;  %v168_v23 = vunpack.c.l.s4 %v1014_v22  ;;  %vm753_vm0 = vcmask 1043456  }
  0x14   :  { %v923_v2 = vld [vmem:[%s1255_s1] sm:$0xff]   ;;  %853 = vmatprep.subr.bf16.mxu1 %v922_v1  ;;  %v927_v6 = vld [vmem:[%s1255_s1 + $0x8] sm:$0xff]   ;;  %v930_v9 = vld [vmem:[%s1255_s1 + $0xd0] sm:$0xff]   ;;  %v171_v30 = vshrl.u32 %v170_v24, 7 }
  0x15   :  { %v924_v3 = vld [vmem:[%s1255_s1 + $0x80] sm:$0xff]   ;;  %832 = vmatpush3.bf16.msra.mxu0 %v923_v2  ;;  %v928_v7 = vld [vmem:[%s1255_s1 + $0x88] sm:$0xff]   ;;  %v931_v10 = vld [vmem:[%s1255_s1 + $0x10] sm:$0xff]   ;;  %v169_v29 = vunpack.c.0.s8 %v168_v23 }
  0x16   :  { %854 = vmatpush3.bf16.msra.mxu1 %v924_v3  ;;  %833 = vmatprep.subr.bf16.mxu0 %v925_v4  ;;  %v932_v11 = vld [vmem:[%s1255_s1 + $0x90] sm:$0xff]   ;;  %v933_v12 = vld [vmem:[%s1255_s1 + $0x58] sm:$0xff]   ;;  %v937_v16 = vld [vmem:[%s1255_s1 + $0x60] sm:$0xff]  }
  0x17   :  { %855 = vmatprep.subr.bf16.mxu1 %v926_v5  ;;  %v934_v13 = vld [vmem:[%s1255_s1 + $0xd8] sm:$0xff]   ;;  %v938_v17 = vld [vmem:[%s1255_s1 + $0xe0] sm:$0xff]   ;;  %v941_v20 = vld [vmem:[%s1255_s1 + $0x68] sm:$0xff]   ;;  %v1137_v35 = vsub.s32 %v169_v29, %v171_v30 }
  0x18   :  { %v935_v14 = vld [vmem:[%s1255_s1 + $0x18] sm:$0xff]   ;;  %v939_v18 = vld [vmem:[%s1255_s1 + $0x20] sm:$0xff]   ;;  %v942_v21 = vld [vmem:[%s1255_s1 + $0xe8] sm:$0xff]  }
  0x19   :  { %834 = vmatpush3.bf16.msra.mxu0 %v927_v6  ;;  %v936_v15 = vld [vmem:[%s1255_s1 + $0x98] sm:$0xff]   ;;  %v940_v19 = vld [vmem:[%s1255_s1 + $0xa0] sm:$0xff]   ;;  %v943_v25 = vld [vmem:[%s1255_s1 + $0x28] sm:$0xff]  }
  0x1a   :  { %856 = vmatpush3.bf16.msra.mxu1 %v928_v7  ;;  %835 = vmatprep.subr.bf16.mxu0 %v929_v8  ;;  %v944_v26 = vld [vmem:[%s1255_s1 + $0xa8] sm:$0xff]   ;;  %v945_v27 = vld [vmem:[%s1255_s1 + $0x70] sm:$0xff]   ;;  %v949_v33 = vld [vmem:[%s1255_s1 + $0x78] sm:$0xff]  }
  0x1b   :  { %857 = vmatprep.subr.bf16.mxu1 %v930_v9  ;;  %v946_v28 = vld [vmem:[%s1255_s1 + $0xf0] sm:$0xff]   ;;  %v950_v34 = vld [vmem:[%s1255_s1 + $0xf8] sm:$0xff]   ;;  %v27_v38 = vld [vmem:[%s1254_s0] sm:$0xff] }
  0x1c   :  { %v947_v31 = vld [vmem:[%s1255_s1 + $0x30] sm:$0xff]   ;;  %v951_v36 = vld [vmem:[%s1255_s1 + $0x38] sm:$0xff]   ;;  %v173_v39 = vrot.slane %v27_v38, %v1137_v35  ;;  %v166_v40 = vcombine.high %v27_v38, %v27_v38  ;;  %v954_v41 = vld [vmem:[%s1255_s1 + $0x140] sm:$0xff]  }
  0x1d   :  { %836 = vmatpush3.bf16.msra.mxu0 %v931_v10  ;;  %v948_v32 = vld [vmem:[%s1255_s1 + $0xb0] sm:$0xff]   ;;  %v952_v37 = vld [vmem:[%s1255_s1 + $0xb8] sm:$0xff]   ;;  %v955_v42 = vld [vmem:[%s1255_s1 + $0x1c0] sm:$0xff]  }
  0x1e   :  { %858 = vmatpush3.bf16.msra.mxu1 %v932_v11  ;;  %837 = vmatprep.subr.bf16.mxu0 %v933_v12  ;;  %v181_v43 = vcombine.high %v173_v39, %v173_v39  ;;  %v180_v44 = vrot.slane %v166_v40, %v1137_v35  ;;  %v956_v45 = vld [vmem:[%s1255_s1 + $0x100] sm:$0xff]   ;;  %v958_v48 = vld [vmem:[%s1255_s1 + $0x148] sm:$0xff]   ;;  %v962_v52 = vld [vmem:[%s1255_s1 + $0x150] sm:$0xff]  }
  0x1f   :  { %859 = vmatprep.subr.bf16.mxu1 %v934_v13  ;;  %v957_v46 = vld [vmem:[%s1255_s1 + $0x180] sm:$0xff]   ;;  %v959_v49 = vld [vmem:[%s1255_s1 + $0x1c8] sm:$0xff]   ;;  %v963_v53 = vld [vmem:[%s1255_s1 + $0x1d0] sm:$0xff]  }
  0x20   :  { %624 = vmatprep.mubr.bf16.mxu0 %v181_v43  ;;  %v182_v47 = vcombine.high %v180_v44, %v180_v44  ;;  %v960_v50 = vld [vmem:[%s1255_s1 + $0x108] sm:$0xff]   ;;  %v964_v54 = vld [vmem:[%s1255_s1 + $0x110] sm:$0xff]   ;;  %v966_v56 = vld [vmem:[%s1255_s1 + $0x158] sm:$0xff]  }
  0x21   :  { %838 = vmatpush3.bf16.msra.mxu0 %v935_v14  ;;  %v961_v51 = vld [vmem:[%s1255_s1 + $0x188] sm:$0xff]   ;;  %v965_v55 = vld [vmem:[%s1255_s1 + $0x190] sm:$0xff]   ;;  %v967_v57 = vld [vmem:[%s1255_s1 + $0x1d8] sm:$0xff]  }
  0x22   :  { %860 = vmatpush3.bf16.msra.mxu1 %v936_v15  ;;  %839 = vmatprep.subr.bf16.mxu0 %v937_v16  ;;  %v968_v58 = vld [vmem:[%s1255_s1 + $0x118] sm:$0xff]   ;;  %v970_v60 = vld [vmem:[%s1255_s1 + $0x160] sm:$0xff]   ;;  %v974_v0 = vld [vmem:[%s1255_s1 + $0x168] sm:$0xff]  }
  0x23   :  { %861 = vmatprep.subr.bf16.mxu1 %v938_v17  ;;  %664 = vmatprep.mubr.bf16.mxu1 %v182_v47  ;;  %v969_v59 = vld [vmem:[%s1255_s1 + $0x198] sm:$0xff]   ;;  %v971_v61 = vld [vmem:[%s1255_s1 + $0x1e0] sm:$0xff]   ;;  %v975_v1 = vld [vmem:[%s1255_s1 + $0x1e8] sm:$0xff]  }
  0x24   :  { %v972_v62 = vld [vmem:[%s1255_s1 + $0x120] sm:$0xff]   ;;  %v976_v2 = vld [vmem:[%s1255_s1 + $0x128] sm:$0xff]   ;;  %v978_v4 = vld [vmem:[%s1255_s1 + $0x170] sm:$0xff]  }
  0x25   :  { %840 = vmatpush3.bf16.msra.mxu0 %v939_v18  ;;  %v973_v63 = vld [vmem:[%s1255_s1 + $0x1a0] sm:$0xff]   ;;  %v977_v3 = vld [vmem:[%s1255_s1 + $0x1a8] sm:$0xff]   ;;  %v979_v5 = vld [vmem:[%s1255_s1 + $0x1f0] sm:$0xff]  }
  0x26   :  { %862 = vmatpush3.bf16.msra.mxu1 %v940_v19  ;;  %841 = vmatprep.subr.bf16.mxu0 %v941_v20  ;;  %v980_v6 = vld [vmem:[%s1255_s1 + $0x130] sm:$0xff]   ;;  %v982_v8 = vld [vmem:[%s1255_s1 + $0x178] sm:$0xff]   ;;  %v28_v11 = vld [vmem:[%s1254_s0 + $0x8] sm:$0xff] }
  0x27   :  { %863 = vmatprep.subr.bf16.mxu1 %v942_v21  ;;  %v981_v7 = vld [vmem:[%s1255_s1 + $0x1b0] sm:$0xff]   ;;  %v983_v9 = vld [vmem:[%s1255_s1 + $0x1f8] sm:$0xff]   ;;  %v190_v13 = vrot.slane %v28_v11, %v1137_v35  ;;  %v183_v14 = vcombine.high %v28_v11, %v28_v11  ;;  %v766_v19 = vld [vmem:[#allocation2] ss:$0 sm:$0xff] }
  0x28   :  { %v984_v10 = vld [vmem:[%s1255_s1 + $0x138] sm:$0xff]  }
  0x29   :  { %842 = vmatpush3.bf16.msra.mxu0 %v943_v25  ;;  %v985_v12 = vld [vmem:[%s1255_s1 + $0x1b8] sm:$0xff]   ;;  %v198_v15 = vcombine.high %v190_v13, %v190_v13  ;;  %v197_v16 = vrot.slane %v183_v14, %v1137_v35 }
  0x2a   :  { %864 = vmatpush3.bf16.msra.mxu1 %v944_v26  ;;  %843 = vmatprep.subr.bf16.mxu0 %v945_v27 }
  0x2b   :  { %865 = vmatprep.subr.bf16.mxu1 %v946_v28  ;;  %v199_v17 = vcombine.high %v197_v16, %v197_v16 }
  0x2d   :  { %844 = vmatpush3.bf16.msra.mxu0 %v947_v31 }
  0x2e   :  { %866 = vmatpush3.bf16.msra.mxu1 %v948_v32  ;;  %845 = vmatprep.subr.bf16.mxu0 %v949_v33 }
  0x2f   :  { %867 = vmatprep.subr.bf16.mxu1 %v950_v34 }
  0x31   :  { %846 = vmatpush3.bf16.msra.mxu0 %v951_v36 }
  0x32   :  { %868 = vmatpush3.bf16.msra.mxu1 %v952_v37  ;;  %875 = vmatprep.subr.bf16.mxu0 %v954_v41 }
  0x33   :  { %897 = vmatprep.subr.bf16.mxu1 %v955_v42 }
  0x34   :  { %625 = vmatmul.mubr.bf16.vlgmr.msra.gmra.mrb[0].mxu0 %v173_v39 }
  0x35   :  { %876 = vmatpush3.bf16.msra.mxu0 %v956_v45  ;;  %665 = vmatmul.mubr.bf16.vlgmr.msra.gmra.mrb[0].mxu1 %v180_v44 }
  0x36   :  { %877 = vmatprep.subr.bf16.mxu0 %v958_v48  ;;  %898 = vmatpush3.bf16.msra.mxu1 %v957_v46 }
  0x37   :  { %899 = vmatprep.subr.bf16.mxu1 %v959_v49  ;;  %704 = vmatprep.mubr.bf16.mxu0 %v198_v15 }
  0x38   :  { %744 = vmatprep.mubr.bf16.mxu1 %v199_v17 }
  0x39   :  { %878 = vmatpush3.bf16.msra.mxu0 %v960_v50 }
  0x3a   :  { %879 = vmatprep.subr.bf16.mxu0 %v962_v52  ;;  %900 = vmatpush3.bf16.msra.mxu1 %v961_v51 }
  0x3b   :  { %901 = vmatprep.subr.bf16.mxu1 %v963_v53 }
  0x3d   :  { %880 = vmatpush3.bf16.msra.mxu0 %v964_v54 }
  0x3e   :  { %881 = vmatprep.subr.bf16.mxu0 %v966_v56  ;;  %902 = vmatpush3.bf16.msra.mxu1 %v965_v55 }
  0x3f   :  { %903 = vmatprep.subr.bf16.mxu1 %v967_v57 }
  0x41   :  { %882 = vmatpush3.bf16.msra.mxu0 %v968_v58 }
  0x42   :  { %883 = vmatprep.subr.bf16.mxu0 %v970_v60  ;;  %904 = vmatpush3.bf16.msra.mxu1 %v969_v59 }
  0x43   :  { %905 = vmatprep.subr.bf16.mxu1 %v971_v61 }
  0x45   :  { %884 = vmatpush3.bf16.msra.mxu0 %v972_v62 }
  0x46   :  { %885 = vmatprep.subr.bf16.mxu0 %v974_v0  ;;  %906 = vmatpush3.bf16.msra.mxu1 %v973_v63 }
  0x47   :  { %907 = vmatprep.subr.bf16.mxu1 %v975_v1 }
  0x49   :  { %886 = vmatpush3.bf16.msra.mxu0 %v976_v2 }
  0x4a   :  { %887 = vmatprep.subr.bf16.mxu0 %v978_v4  ;;  %908 = vmatpush3.bf16.msra.mxu1 %v977_v3 }
  0x4b   :  { %909 = vmatprep.subr.bf16.mxu1 %v979_v5 }
  0x4d   :  { %888 = vmatpush3.bf16.msra.mxu0 %v980_v6 }
  0x4e   :  { %889 = vmatprep.subr.bf16.mxu0 %v982_v8  ;;  %910 = vmatpush3.bf16.msra.mxu1 %v981_v7 }
  0x4f   :  { %911 = vmatprep.subr.bf16.mxu1 %v983_v9 }
  0x51   :  { %890 = vmatpush3.bf16.msra.mxu0 %v984_v10 }
  0x52   :  { %912 = vmatpush3.bf16.msra.mxu1 %v985_v12 }
  0x54   :  { %705 = vmatmul.mubr.bf16.vlgmr.msra.gmra.mrb[4].mxu0 %v190_v13 }
  0x55   :  { %745 = vmatmul.mubr.bf16.vlgmr.msra.gmra.mrb[4].mxu1 %v197_v16 }
 0x107   :  { %v847_v18 = vpop.f32.mrb[0].mxu0 }
 0x108   :  { %v848_v20 = vpop.f32.mrb[1].mxu0  ;;  %v869_v21 = vpop.f32.mrb[0].mxu1 }
 0x109   :  { %v849_v22 = vadd.f32 %v848_v20, %v847_v18  ;;  %v850_v23 = vpop.f32.mrb[2].mxu0  ;;  %v870_v24 = vpop.f32.mrb[1].mxu1 }
 0x10a   :  { %v851_v25 = vpop.f32.mrb[3].mxu0  ;;  %v871_v27 = vadd.f32 %v870_v24, %v869_v21  ;;  %v872_v28 = vpop.f32.mrb[2].mxu1 }
 0x10b   :  { %v627_v26 = vadd.f32 %v849_v22, %v766_v19  ;;  %v873_v29 = vpop.f32.mrb[3].mxu1 }
 0x10d   :  { %v667_v30 = vadd.f32 %v871_v27, %v627_v26 }
 0x127   :  { %v891_v31 = vpop.f32.mrb[4].mxu0 }
 0x128   :  { %v892_v32 = vpop.f32.mrb[5].mxu0  ;;  %v913_v33 = vpop.f32.mrb[4].mxu1 }
 0x129   :  { %v893_v34 = vadd.f32 %v892_v32, %v891_v31  ;;  %v894_v35 = vpop.f32.mrb[6].mxu0  ;;  %v914_v36 = vpop.f32.mrb[5].mxu1 }
 0x12a   :  { %v895_v37 = vpop.f32.mrb[7].mxu0  ;;  %v915_v39 = vadd.f32 %v914_v36, %v913_v33  ;;  %v916_v40 = vpop.f32.mrb[6].mxu1 }
 0x12b   :  { %v707_v38 = vadd.f32 %v893_v34, %v667_v30  ;;  %v917_v41 = vpop.f32.mrb[7].mxu1 }
 0x12d   :  { %v747_v42 = vadd.f32 %v915_v39, %v707_v38 }
 0x12f   :  { %v752_v43 = vmul.f32 %v747_v42, %v747_v42 }
 0x131   :  { %v754_v44 = vsel %vm753_vm0, %v752_v43, 0.0 }
 0x132   :  { %755 = vadd.xlane.f32.xlu0 %v754_v44 }
 0x1bf   :  { %v756_v45 = vpop.xlane.xlu0 %755 }
 0x1c0   :  { %v757_v46 = vmax.f32 %v756_v45, 1e-24 }
 0x1c2   :  { %987 = vrsqrt.f32 %v757_v46 }
 0x1cc   :  { %v988_v47 = vpop.eup %987 }
 0x1cd   :  { %v759_v48 = vmul.f32 %v988_v47, %v747_v42 }
 0x1cf   :  { %760 = vst [vmem:[%s1257_s3] sm:$0xf] %v759_v48 }
 0x1d0   :  { %765 = vsyncpa [#allocation3], 1 }

// kernel: _moco_step.3
= control target key start
LH: loop header
LB: loop body
LE: loop exit
PB: predicated region body
PF: predicated region fallthrough
CT: control target
= control target key end

     0   :  { %vm727_vm0 = vcmask 1045504   ;;  %s1204_s1 = inlined_call_operand.vmem [shape: bf16[1024,128], index: 1, kind: input, shape index: {}]   ;;  %s1205_s0 = inlined_call_operand.vmem [shape: bf16[6,1024], index: 0, kind: input, shape index: {}]   ;;  %s1206_s2 = inlined_call_operand.vmem [shape: f32[1,128], index: 2, kind: input, shape index: {}]   ;;  %s1207_s3 = inlined_call_operand.vmem [shape: f32[6,128], index: 3, kind: output, shape index: {}]  }
   0x1   :  { %v900_v0 = vld [vmem:[%s1204_s1 + $0x40] sm:$0xff]   ;;  %v904_v4 = vld [vmem:[%s1204_s1 + $0x48] sm:$0xff]   ;;  %v908_v8 = vld [vmem:[%s1204_s1 + $0x50] sm:$0xff]  }
   0x2   :  { %v901_v1 = vld [vmem:[%s1204_s1 + $0xc0] sm:$0xff]   ;;  %812 = vmatprep.subr.bf16.mxu0 %v900_v0  ;;  %v905_v5 = vld [vmem:[%s1204_s1 + $0xc8] sm:$0xff]   ;;  %v909_v9 = vld [vmem:[%s1204_s1 + $0xd0] sm:$0xff]  }
   0x3   :  { %v902_v2 = vld [vmem:[%s1204_s1] sm:$0xff]   ;;  %834 = vmatprep.subr.bf16.mxu1 %v901_v1  ;;  %v906_v6 = vld [vmem:[%s1204_s1 + $0x8] sm:$0xff]   ;;  %v910_v10 = vld [vmem:[%s1204_s1 + $0x10] sm:$0xff]  }
   0x4   :  { %v903_v3 = vld [vmem:[%s1204_s1 + $0x80] sm:$0xff]   ;;  %813 = vmatpush3.bf16.msra.mxu0 %v902_v2  ;;  %v907_v7 = vld [vmem:[%s1204_s1 + $0x88] sm:$0xff]   ;;  %v911_v11 = vld [vmem:[%s1204_s1 + $0x90] sm:$0xff]  }
   0x5   :  { %835 = vmatpush3.bf16.msra.mxu1 %v903_v3  ;;  %814 = vmatprep.subr.bf16.mxu0 %v904_v4  ;;  %v912_v12 = vld [vmem:[%s1204_s1 + $0x58] sm:$0xff]   ;;  %v916_v16 = vld [vmem:[%s1204_s1 + $0x60] sm:$0xff]   ;;  %v920_v20 = vld [vmem:[%s1204_s1 + $0x68] sm:$0xff]  }
   0x6   :  { %836 = vmatprep.subr.bf16.mxu1 %v905_v5  ;;  %v913_v13 = vld [vmem:[%s1204_s1 + $0xd8] sm:$0xff]   ;;  %v917_v17 = vld [vmem:[%s1204_s1 + $0xe0] sm:$0xff]   ;;  %v921_v21 = vld [vmem:[%s1204_s1 + $0xe8] sm:$0xff]  }
   0x7   :  { %v914_v14 = vld [vmem:[%s1204_s1 + $0x18] sm:$0xff]   ;;  %v918_v18 = vld [vmem:[%s1204_s1 + $0x20] sm:$0xff]   ;;  %v922_v22 = vld [vmem:[%s1204_s1 + $0x28] sm:$0xff]  }
   0x8   :  { %815 = vmatpush3.bf16.msra.mxu0 %v906_v6  ;;  %v915_v15 = vld [vmem:[%s1204_s1 + $0x98] sm:$0xff]   ;;  %v919_v19 = vld [vmem:[%s1204_s1 + $0xa0] sm:$0xff]   ;;  %v923_v23 = vld [vmem:[%s1204_s1 + $0xa8] sm:$0xff]  }
   0x9   :  { %837 = vmatpush3.bf16.msra.mxu1 %v907_v7  ;;  %816 = vmatprep.subr.bf16.mxu0 %v908_v8  ;;  %v924_v24 = vld [vmem:[%s1204_s1 + $0x70] sm:$0xff]   ;;  %v928_v28 = vld [vmem:[%s1204_s1 + $0x78] sm:$0xff]   ;;  %v15_v32 = vld [vmem:[%s1205_s0] sm:$0x77] }
   0xa   :  { %838 = vmatprep.subr.bf16.mxu1 %v909_v9  ;;  %v925_v25 = vld [vmem:[%s1204_s1 + $0xf0] sm:$0xff]   ;;  %v929_v29 = vld [vmem:[%s1204_s1 + $0xf8] sm:$0xff]   ;;  %v16_v33 = vld [vmem:[%s1205_s0 + $0x8] sm:$0x77]  ;;  %v740_v34 = vcombine.low %v15_v32, %v15_v32  ;;  %v741_v35 = vcombine.high %v15_v32, %v15_v32 }
   0xb   :  { %v926_v26 = vld [vmem:[%s1204_s1 + $0x30] sm:$0xff]   ;;  %v930_v30 = vld [vmem:[%s1204_s1 + $0x38] sm:$0xff]   ;;  %v742_v36 = vcombine.low %v16_v33, %v16_v33  ;;  %v743_v37 = vcombine.high %v16_v33, %v16_v33  ;;  %v936_v38 = vld [vmem:[%s1204_s1 + $0x140] sm:$0xff]  }
   0xc   :  { %817 = vmatpush3.bf16.msra.mxu0 %v910_v10  ;;  %v927_v27 = vld [vmem:[%s1204_s1 + $0xb0] sm:$0xff]   ;;  %v931_v31 = vld [vmem:[%s1204_s1 + $0xb8] sm:$0xff]   ;;  %v937_v39 = vld [vmem:[%s1204_s1 + $0x1c0] sm:$0xff]   ;;  %598 = vmatprep.mubr.bf16.mxu0 %v741_v35 }
   0xd   :  { %839 = vmatpush3.bf16.msra.mxu1 %v911_v11  ;;  %818 = vmatprep.subr.bf16.mxu0 %v912_v12  ;;  %v938_v40 = vld [vmem:[%s1204_s1 + $0x100] sm:$0xff]   ;;  %v940_v42 = vld [vmem:[%s1204_s1 + $0x148] sm:$0xff]   ;;  %v944_v46 = vld [vmem:[%s1204_s1 + $0x150] sm:$0xff]  }
   0xe   :  { %840 = vmatprep.subr.bf16.mxu1 %v913_v13  ;;  %638 = vmatprep.mubr.bf16.mxu1 %v743_v37  ;;  %v939_v41 = vld [vmem:[%s1204_s1 + $0x180] sm:$0xff]   ;;  %v941_v43 = vld [vmem:[%s1204_s1 + $0x1c8] sm:$0xff]   ;;  %v945_v47 = vld [vmem:[%s1204_s1 + $0x1d0] sm:$0xff]  }
   0xf   :  { %v942_v44 = vld [vmem:[%s1204_s1 + $0x108] sm:$0xff]   ;;  %v946_v48 = vld [vmem:[%s1204_s1 + $0x110] sm:$0xff]   ;;  %v948_v50 = vld [vmem:[%s1204_s1 + $0x158] sm:$0xff]  }
  0x10   :  { %819 = vmatpush3.bf16.msra.mxu0 %v914_v14  ;;  %v943_v45 = vld [vmem:[%s1204_s1 + $0x188] sm:$0xff]   ;;  %v947_v49 = vld [vmem:[%s1204_s1 + $0x190] sm:$0xff]   ;;  %v949_v51 = vld [vmem:[%s1204_s1 + $0x1d8] sm:$0xff]  }
  0x11   :  { %841 = vmatpush3.bf16.msra.mxu1 %v915_v15  ;;  %820 = vmatprep.subr.bf16.mxu0 %v916_v16  ;;  %v950_v52 = vld [vmem:[%s1204_s1 + $0x118] sm:$0xff]   ;;  %v952_v54 = vld [vmem:[%s1204_s1 + $0x160] sm:$0xff]   ;;  %v956_v58 = vld [vmem:[%s1204_s1 + $0x168] sm:$0xff]  }
  0x12   :  { %842 = vmatprep.subr.bf16.mxu1 %v917_v17  ;;  %v951_v53 = vld [vmem:[%s1204_s1 + $0x198] sm:$0xff]   ;;  %v953_v55 = vld [vmem:[%s1204_s1 + $0x1e0] sm:$0xff]   ;;  %v957_v59 = vld [vmem:[%s1204_s1 + $0x1e8] sm:$0xff]  }
  0x13   :  { %v954_v56 = vld [vmem:[%s1204_s1 + $0x120] sm:$0xff]   ;;  %v958_v60 = vld [vmem:[%s1204_s1 + $0x128] sm:$0xff]   ;;  %v960_v62 = vld [vmem:[%s1204_s1 + $0x170] sm:$0xff]  }
  0x14   :  { %821 = vmatpush3.bf16.msra.mxu0 %v918_v18  ;;  %v955_v57 = vld [vmem:[%s1204_s1 + $0x1a0] sm:$0xff]   ;;  %v959_v61 = vld [vmem:[%s1204_s1 + $0x1a8] sm:$0xff]   ;;  %v961_v63 = vld [vmem:[%s1204_s1 + $0x1f0] sm:$0xff]  }
  0x15   :  { %843 = vmatpush3.bf16.msra.mxu1 %v919_v19  ;;  %822 = vmatprep.subr.bf16.mxu0 %v920_v20  ;;  %v962_v0 = vld [vmem:[%s1204_s1 + $0x130] sm:$0xff]   ;;  %v964_v2 = vld [vmem:[%s1204_s1 + $0x178] sm:$0xff]   ;;  %v739_v14 = vld [vmem:[%s1206_s2] ss:$0 sm:$0xff] }
  0x16   :  { %844 = vmatprep.subr.bf16.mxu1 %v921_v21  ;;  %v963_v1 = vld [vmem:[%s1204_s1 + $0x1b0] sm:$0xff]   ;;  %v965_v3 = vld [vmem:[%s1204_s1 + $0x1f8] sm:$0xff]  }
  0x17   :  { %v966_v4 = vld [vmem:[%s1204_s1 + $0x138] sm:$0xff]   ;;  %v17_v6 = vld [vmem:[%s1205_s0 + $0x10] sm:$0x77] }
  0x18   :  { %823 = vmatpush3.bf16.msra.mxu0 %v922_v22  ;;  %v967_v5 = vld [vmem:[%s1204_s1 + $0x1b8] sm:$0xff]   ;;  %v744_v7 = vcombine.low %v17_v6, %v17_v6  ;;  %v745_v8 = vcombine.high %v17_v6, %v17_v6 }
  0x19   :  { %845 = vmatpush3.bf16.msra.mxu1 %v923_v23  ;;  %824 = vmatprep.subr.bf16.mxu0 %v924_v24  ;;  %v18_v9 = vld [vmem:[%s1205_s0 + $0x18] sm:$0x77] }
  0x1a   :  { %846 = vmatprep.subr.bf16.mxu1 %v925_v25  ;;  %v746_v10 = vcombine.low %v18_v9, %v18_v9  ;;  %v747_v11 = vcombine.high %v18_v9, %v18_v9 }
  0x1c   :  { %825 = vmatpush3.bf16.msra.mxu0 %v926_v26 }
  0x1d   :  { %847 = vmatpush3.bf16.msra.mxu1 %v927_v27  ;;  %826 = vmatprep.subr.bf16.mxu0 %v928_v28 }
  0x1e   :  { %848 = vmatprep.subr.bf16.mxu1 %v929_v29 }
  0x20   :  { %827 = vmatpush3.bf16.msra.mxu0 %v930_v30 }
  0x21   :  { %849 = vmatpush3.bf16.msra.mxu1 %v931_v31  ;;  %856 = vmatprep.subr.bf16.mxu0 %v936_v38 }
  0x22   :  { %878 = vmatprep.subr.bf16.mxu1 %v937_v39 }
  0x23   :  { %599 = vmatmul.mubr.bf16.vlgmr.msra.gmra.mrb[0].mxu0 %v740_v34 }
  0x24   :  { %639 = vmatmul.mubr.bf16.vlgmr.msra.gmra.mrb[0].mxu1 %v742_v36  ;;  %857 = vmatpush3.bf16.msra.mxu0 %v938_v40 }
  0x25   :  { %879 = vmatpush3.bf16.msra.mxu1 %v939_v41  ;;  %858 = vmatprep.subr.bf16.mxu0 %v940_v42 }
  0x26   :  { %880 = vmatprep.subr.bf16.mxu1 %v941_v43  ;;  %678 = vmatprep.mubr.bf16.mxu0 %v745_v8 }
  0x27   :  { %718 = vmatprep.mubr.bf16.mxu1 %v747_v11 }
  0x28   :  { %859 = vmatpush3.bf16.msra.mxu0 %v942_v44 }
  0x29   :  { %881 = vmatpush3.bf16.msra.mxu1 %v943_v45  ;;  %860 = vmatprep.subr.bf16.mxu0 %v944_v46 }
  0x2a   :  { %882 = vmatprep.subr.bf16.mxu1 %v945_v47 }
  0x2c   :  { %861 = vmatpush3.bf16.msra.mxu0 %v946_v48 }
  0x2d   :  { %883 = vmatpush3.bf16.msra.mxu1 %v947_v49  ;;  %862 = vmatprep.subr.bf16.mxu0 %v948_v50 }
  0x2e   :  { %884 = vmatprep.subr.bf16.mxu1 %v949_v51 }
  0x30   :  { %863 = vmatpush3.bf16.msra.mxu0 %v950_v52 }
  0x31   :  { %885 = vmatpush3.bf16.msra.mxu1 %v951_v53  ;;  %864 = vmatprep.subr.bf16.mxu0 %v952_v54 }
  0x32   :  { %886 = vmatprep.subr.bf16.mxu1 %v953_v55 }
  0x34   :  { %865 = vmatpush3.bf16.msra.mxu0 %v954_v56 }
  0x35   :  { %887 = vmatpush3.bf16.msra.mxu1 %v955_v57  ;;  %866 = vmatprep.subr.bf16.mxu0 %v956_v58 }
  0x36   :  { %888 = vmatprep.subr.bf16.mxu1 %v957_v59 }
  0x38   :  { %867 = vmatpush3.bf16.msra.mxu0 %v958_v60 }
  0x39   :  { %889 = vmatpush3.bf16.msra.mxu1 %v959_v61  ;;  %868 = vmatprep.subr.bf16.mxu0 %v960_v62 }
  0x3a   :  { %890 = vmatprep.subr.bf16.mxu1 %v961_v63 }
  0x3c   :  { %869 = vmatpush3.bf16.msra.mxu0 %v962_v0 }
  0x3d   :  { %891 = vmatpush3.bf16.msra.mxu1 %v963_v1  ;;  %870 = vmatprep.subr.bf16.mxu0 %v964_v2 }
  0x3e   :  { %892 = vmatprep.subr.bf16.mxu1 %v965_v3 }
  0x40   :  { %871 = vmatpush3.bf16.msra.mxu0 %v966_v4 }
  0x41   :  { %893 = vmatpush3.bf16.msra.mxu1 %v967_v5 }
  0x43   :  { %679 = vmatmul.mubr.bf16.vlgmr.msra.gmra.mrb[4].mxu0 %v744_v7 }
  0x44   :  { %719 = vmatmul.mubr.bf16.vlgmr.msra.gmra.mrb[4].mxu1 %v746_v10 }
  0xf6   :  { %v828_v12 = vpop.f32.mrb[0].mxu0 }
  0xf7   :  { %v850_v13 = vpop.f32.mrb[0].mxu1  ;;  %v829_v15 = vpop.f32.mrb[1].mxu0 }
  0xf8   :  { %v851_v16 = vpop.f32.mrb[1].mxu1  ;;  %v830_v17 = vadd.f32 %v829_v15, %v828_v12  ;;  %v831_v19 = vpop.f32.mrb[2].mxu0 }
  0xf9   :  { %v852_v18 = vadd.f32 %v851_v16, %v850_v13  ;;  %v853_v20 = vpop.f32.mrb[2].mxu1  ;;  %v832_v21 = vpop.f32.mrb[3].mxu0 }
  0xfa   :  { %v854_v22 = vpop.f32.mrb[3].mxu1  ;;  %v601_v23 = vadd.f32 %v830_v17, %v739_v14 }
  0xfc   :  { %v641_v24 = vadd.f32 %v852_v18, %v601_v23 }
 0x116   :  { %v872_v25 = vpop.f32.mrb[4].mxu0 }
 0x117   :  { %v894_v26 = vpop.f32.mrb[4].mxu1  ;;  %v873_v27 = vpop.f32.mrb[5].mxu0 }
 0x118   :  { %v895_v28 = vpop.f32.mrb[5].mxu1  ;;  %v874_v29 = vadd.f32 %v873_v27, %v872_v25  ;;  %v875_v31 = vpop.f32.mrb[6].mxu0 }
 0x119   :  { %v896_v30 = vadd.f32 %v895_v28, %v894_v26  ;;  %v897_v32 = vpop.f32.mrb[6].mxu1  ;;  %v876_v33 = vpop.f32.mrb[7].mxu0 }
 0x11a   :  { %v898_v34 = vpop.f32.mrb[7].mxu1  ;;  %v681_v35 = vadd.f32 %v874_v29, %v641_v24 }
 0x11c   :  { %v721_v36 = vadd.f32 %v896_v30, %v681_v35 }
 0x11e   :  { %v726_v37 = vmul.f32 %v721_v36, %v721_v36 }
 0x120   :  { %v728_v38 = vsel %vm727_vm0, %v726_v37, 0.0 }
 0x121   :  { %729 = vadd.xlane.f32.xlu0 %v728_v38 }
 0x1ae   :  { %v730_v39 = vpop.xlane.xlu0 %729 }
 0x1af   :  { %v731_v40 = vmax.f32 %v730_v39, 1e-24 }
 0x1b1   :  { %972 = vrsqrt.f32 %v731_v40 }
 0x1bb   :  { %v973_v41 = vpop.eup %972 }
 0x1bc   :  { %v733_v42 = vmul.f32 %v973_v41, %v721_v36 }
 0x1be   :  { %734 = vst [vmem:[%s1207_s3] sm:$0x3f] %v733_v42 }

</bundles_post_ra>
